<compile_context>
chip_gen: v6e
topology: v6e:2x2x1
jax: 0.10.0
libtpu: 0.0.40
codegen_flags: <defaults>
</compile_context>

<pallas_src>
import jax
import jax.numpy as jnp
from jax.experimental import pallas as pl
from jax.experimental.pallas import tpu as pltpu

EPS = 1e-5      # torch.nn.BatchNorm1d default eps
LANE = 128
SUBLANE = 8


def _round_up(n, m):
    return (n + m - 1) // m * m


# ----------------------------- Pallas kernel ------------------------------ #
def _make_kernel(P, row_offs, din_pads):
    """Kernel closure with static per-layer row offsets / padded din sizes."""

    def kernel(x_ref, w_ref, p_ref, out_ref):
        B = x_ref.shape[0]
        inv_b = 1.0 / float(B)

        # Linear (bias dropped, cancels in BN) + BatchNorm (training-mode batch
        # stats, two-pass, fused scale) + optional ReLU.
        def lin_bn(h, i, relu):
            dp = din_pads[i]
            r0 = row_offs[i]
            w = w_ref[r0:r0 + dp, :]                           # (dp, P) static slice
            h = jnp.dot(h[:, :dp], w, preferred_element_type=jnp.float32)
            mean = jnp.sum(h, axis=0, keepdims=True) * inv_b   # (1, P)
            d = h - mean
            var = jnp.sum(d * d, axis=0, keepdims=True) * inv_b  # biased var
            gamma = p_ref[0:1, i * P:(i + 1) * P]              # (1, P)
            beta = p_ref[1:2, i * P:(i + 1) * P]               # (1, P)
            scale = gamma * jax.lax.rsqrt(var + EPS)           # EUP rsqrt (free slot)
            h = d * scale + beta
            if relu:
                h = jnp.maximum(h, 0.0)
            return h

        h = x_ref[...]                         # already f32, lane-dense, padded

        # encoder
        h = lin_bn(h, 0, True)                 # enc_1 + BN1 + relu
        h = lin_bn(h, 1, True)                 # enc_2 + BN2 + relu
        h = lin_bn(h, 2, True)                 # enc_3 + BN3 + relu
        # latent chain (no relu)
        z1 = lin_bn(h, 3, False)               # z1_layer + BN4
        z2 = lin_bn(z1, 4, False)              # z2_layer + BN5
        z3 = lin_bn(z2, 5, False)              # z3_layer + BN6
        out_ref[:, P:2 * P] = z3               # store early: frees z3 live range
        # decoder
        h = lin_bn(z3, 6, True)                # dec_1 + BN7 + relu
        h = lin_bn(h, 7, True)                 # dec_2 + BN8 + relu
        h = lin_bn(h, 8, True)                 # dec_3 + BN9 + relu
        # x_bar layer: keeps its bias (no BN after it)
        dp = din_pads[9]
        r0 = row_offs[9]
        x_bar = jnp.dot(h[:, :dp], w_ref[r0:r0 + dp, :],
                        preferred_element_type=jnp.float32) + p_ref[2:3, 0:P]
        out_ref[:, 0:P] = x_bar                # lane-dense slab: [ x_bar | z3 ]

    return kernel


# --------------------------- one-time init + wrapper ------------------------ #
def make_ae_forward(ws, bs, gs, bes):
    """Pack parameters once and return a jitted forward(x) -> (x_bar, z3)."""
    n_input = ws[0].shape[0]
    n_z3 = ws[5].shape[1]
    max_feat = max([n_input] + [w.shape[1] for w in ws])
    P = _round_up(max_feat, LANE)

    # Contraction dims padded only to sublane multiples -> compact weight slab.
    din_pads = [_round_up(w.shape[0], SUBLANE) for w in ws]
    row_offs = []
    off = 0
    for dp in din_pads:
        row_offs.append(off)
        off += dp
    total_rows = off                            # multiple of 8 by construction

    # Weight slab (stored (in, out)), zero-padded; padded lanes stay exactly 0
    # through the whole network (zero weight rows/cols, zero gamma/beta).
    w_packed = jnp.zeros((total_rows, P), jnp.float32)
    for i, w in enumerate(ws):
        din, dout = w.shape
        w_packed = w_packed.at[row_offs[i]:row_offs[i] + din, 0:dout].set(w)

    # gamma / beta / final bias merged into a single lane-dense slab (one DMA).
    p_packed = jnp.zeros((3, 9 * P), jnp.float32)
    for i in range(9):
        d = gs[i].shape[1]
        p_packed = p_packed.at[0, i * P:i * P + d].set(gs[i][0])
        p_packed = p_packed.at[1, i * P:i * P + d].set(bes[i][0])
    p_packed = p_packed.at[2, 0:n_input].set(bs[9][0])
    # Linear biases for layers 0..8 are dropped (cancel exactly in training BN).

    kernel = _make_kernel(P, tuple(row_offs), tuple(din_pads))
    sum_dp = sum(din_pads)

    @jax.jit
    def _forward(x, w_slab, p_slab):
        B = x.shape[0]
        x_pad = jnp.zeros((B, P), jnp.float32).at[:, 0:n_input].set(
            x.astype(jnp.float32))
        cost = pl.CostEstimate(
            flops=2 * B * P * sum_dp,
            transcendentals=9 * P,
            bytes_accessed=4 * (B * P + total_rows * P + 3 * 9 * P + B * 2 * P),
        )
        out = pl.pallas_call(
            kernel,
            out_shape=jax.ShapeDtypeStruct((B, 2 * P), jnp.float32),
            in_specs=[pl.BlockSpec(memory_space=pltpu.VMEM)] * 3,
            out_specs=pl.BlockSpec(memory_space=pltpu.VMEM),
            cost_estimate=cost,
        )(x_pad, w_slab, p_slab)
        return out[:, 0:n_input], out[:, P:P + n_z3]

    def forward(x):
        return _forward(x, w_packed, p_packed)

    return forward


# ----------------------------- pure-JAX reference -------------------------- #
def ae_reference(x, ws, bs, gs, bes):
    def lin(h, i):
        return h @ ws[i] + bs[i]

    def bn(h, i):
        m = jnp.mean(h, axis=0, keepdims=True)
        v = jnp.mean((h - m) ** 2, axis=0, keepdims=True)
        return (h - m) / jnp.sqrt(v + EPS) * gs[i] + bes[i]

    h = jax.nn.relu(bn(lin(x, 0), 0))
    h = jax.nn.relu(bn(lin(h, 1), 1))
    h = jax.nn.relu(bn(lin(h, 2), 2))
    z1 = bn(lin(h, 3), 3)
    z2 = bn(lin(z1, 4), 4)
    z3 = bn(lin(z2, 5), 5)
    h = jax.nn.relu(bn(lin(z3, 6), 6))
    h = jax.nn.relu(bn(lin(h, 7), 7))
    h = jax.nn.relu(bn(lin(h, 8), 8))
    x_bar = lin(h, 9)
    return x_bar, z3


# --------------------------------- main ------------------------------------ #
if __name__ == "__main__":
    # module hyperparameters (small, consistent with the Linear stack)
    n_input = 64
    n_enc_1, n_enc_2, n_enc_3 = 32, 32, 32
    n_z1, n_z2, n_z3 = 16, 16, 8
    n_dec_1, n_dec_2, n_dec_3 = 32, 32, 32
    batch = 8

    layer_dims = [
        (n_input, n_enc_1),  # enc_1
        (n_enc_1, n_enc_2),  # enc_2
        (n_enc_2, n_enc_3),  # enc_3
        (n_enc_3, n_z1),     # z1_layer
        (n_z1, n_z2),        # z2_layer
        (n_z2, n_z3),        # z3_layer
        (n_z3, n_dec_1),     # dec_1
        (n_dec_1, n_dec_2),  # dec_2
        (n_dec_2, n_dec_3),  # dec_3
        (n_dec_3, n_input),  # x_bar_layer
    ]
    bn_dims = [n_enc_1, n_enc_2, n_enc_3, n_z1, n_z2, n_z3,
               n_dec_1, n_dec_2, n_dec_3]

    key = jax.random.PRNGKey(0)
    keys = jax.random.split(key, 1 + 4 * 10)

    # deterministic synthetic parameters
    ws, bs = [], []
    for i, (din, dout) in enumerate(layer_dims):
        kw, kb = keys[1 + 2 * i], keys[2 + 2 * i]
        scale = 1.0 / jnp.sqrt(jnp.float32(din))
        # stored as (in, out) so the kernel computes x @ W (== torch x @ W.T)
        ws.append(jax.random.uniform(kw, (din, dout), jnp.float32, -scale, scale))
        bs.append(jax.random.uniform(kb, (1, dout), jnp.float32, -scale, scale))

    gs, bes = [], []
    for i, d in enumerate(bn_dims):
        kg, kbeta = keys[21 + 2 * i], keys[22 + 2 * i]
        gs.append(1.0 + 0.1 * jax.random.normal(kg, (1, d), jnp.float32))
        bes.append(0.1 * jax.random.normal(kbeta, (1, d), jnp.float32))

    x = jax.random.normal(keys[0], (batch, n_input), jnp.float32)

    ae_forward = make_ae_forward(ws, bs, gs, bes)   # one-time packing
    x_bar, z3 = ae_forward(x)
    jax.block_until_ready((x_bar, z3))

    # correctness check against pure-JAX reference (keeps all biases; the
    # kernel's bias-drop rewrite is mathematically equivalent up to fp rounding)
    x_bar_ref, z3_ref = ae_reference(x, ws, bs, gs, bes)
    assert jnp.allclose(x_bar, x_bar_ref, atol=1e-3, rtol=1e-3), "x_bar mismatch"
    assert jnp.allclose(z3, z3_ref, atol=1e-3, rtol=1e-3), "z3 mismatch"

    print("KERNEL_OK")
</pallas_src>

<mosaic_0001>
module attributes {stable_mosaic.version = 11 : i64} {
  func.func @kernel(%arg0: memref<8x128xf32, #tpu.memory_space<vmem>>, %arg1: memref<296x128xf32, #tpu.memory_space<vmem>>, %arg2: memref<3x1152xf32, #tpu.memory_space<vmem>>, %arg3: memref<8x256xf32, #tpu.memory_space<vmem>>) attributes {dimension_semantics = [], scalar_prefetch = 0 : i64, scratch_operands = 0 : i64, tpu.core_type = #tpu.core_type<tc>} {
    %c0 = arith.constant 0 : index
    %c0_0 = arith.constant 0 : index
    %0 = vector.load %arg0[%c0, %c0_0] : memref<8x128xf32, #tpu.memory_space<vmem>>, vector<8x128xf32>
    %c0_1 = arith.constant 0 : index
    %c0_2 = arith.constant 0 : index
    %1 = vector.load %arg1[%c0_1, %c0_2] : memref<296x128xf32, #tpu.memory_space<vmem>>, vector<64x128xf32>
    %2 = vector.extract_strided_slice %0 {offsets = [0, 0], sizes = [8, 64], strides = [1, 1]} : vector<8x128xf32> to vector<8x64xf32>
    %cst = arith.constant dense<0.000000e+00> : vector<8x128xf32>
    %3 = tpu.matmul %2, %1, %cst {dimension_numbers = #tpu.dot_dimension_numbers<[1], [0], [0], [1], [0, 0, 1, 1], [], []>} : vector<8x64xf32>, vector<64x128xf32>, vector<8x128xf32> -> vector<8x128xf32>
    %cst_3 = arith.constant dense<0.000000e+00> : vector<128xf32>
    %4 = vector.multi_reduction <add>, %3, %cst_3 [0] : vector<8x128xf32> to vector<128xf32>
    %5 = vector.shape_cast %4 : vector<128xf32> to vector<1x128xf32>
    %cst_4 = arith.constant 1.250000e-01 : f32
    %6 = vector.broadcast %cst_4 : f32 to vector<1x128xf32>
    %7 = arith.mulf %5, %6 : vector<1x128xf32>
    %8 = vector.broadcast %7 : vector<1x128xf32> to vector<8x128xf32>
    %9 = arith.subf %3, %8 : vector<8x128xf32>
    %10 = arith.mulf %9, %9 : vector<8x128xf32>
    %cst_5 = arith.constant dense<0.000000e+00> : vector<128xf32>
    %11 = vector.multi_reduction <add>, %10, %cst_5 [0] : vector<8x128xf32> to vector<128xf32>
    %12 = vector.shape_cast %11 : vector<128xf32> to vector<1x128xf32>
    %cst_6 = arith.constant 1.250000e-01 : f32
    %13 = vector.broadcast %cst_6 : f32 to vector<1x128xf32>
    %14 = arith.mulf %12, %13 : vector<1x128xf32>
    %c0_7 = arith.constant 0 : index
    %c0_8 = arith.constant 0 : index
    %15 = vector.load %arg2[%c0_7, %c0_8] : memref<3x1152xf32, #tpu.memory_space<vmem>>, vector<1x128xf32>
    %c1 = arith.constant 1 : index
    %c0_9 = arith.constant 0 : index
    %16 = vector.load %arg2[%c1, %c0_9] : memref<3x1152xf32, #tpu.memory_space<vmem>>, vector<1x128xf32>
    %cst_10 = arith.constant 9.99999974E-6 : f32
    %17 = vector.broadcast %cst_10 : f32 to vector<1x128xf32>
    %18 = arith.addf %14, %17 : vector<1x128xf32>
    %19 = math.rsqrt %18 : vector<1x128xf32>
    %20 = arith.mulf %15, %19 : vector<1x128xf32>
    %21 = vector.broadcast %20 : vector<1x128xf32> to vector<8x128xf32>
    %22 = arith.mulf %9, %21 : vector<8x128xf32>
    %23 = vector.broadcast %16 : vector<1x128xf32> to vector<8x128xf32>
    %24 = arith.addf %22, %23 : vector<8x128xf32>
    %cst_11 = arith.constant 0.000000e+00 : f32
    %25 = vector.broadcast %cst_11 : f32 to vector<8x128xf32>
    %26 = arith.maximumf %24, %25 : vector<8x128xf32>
    %c64 = arith.constant 64 : index
    %c0_12 = arith.constant 0 : index
    %27 = vector.load %arg1[%c64, %c0_12] : memref<296x128xf32, #tpu.memory_space<vmem>>, vector<32x128xf32>
    %28 = vector.extract_strided_slice %26 {offsets = [0, 0], sizes = [8, 32], strides = [1, 1]} : vector<8x128xf32> to vector<8x32xf32>
    %cst_13 = arith.constant dense<0.000000e+00> : vector<8x128xf32>
    %29 = tpu.matmul %28, %27, %cst_13 {dimension_numbers = #tpu.dot_dimension_numbers<[1], [0], [0], [1], [0, 0, 1, 1], [], []>} : vector<8x32xf32>, vector<32x128xf32>, vector<8x128xf32> -> vector<8x128xf32>
    %cst_14 = arith.constant dense<0.000000e+00> : vector<128xf32>
    %30 = vector.multi_reduction <add>, %29, %cst_14 [0] : vector<8x128xf32> to vector<128xf32>
    %31 = vector.shape_cast %30 : vector<128xf32> to vector<1x128xf32>
    %cst_15 = arith.constant 1.250000e-01 : f32
    %32 = vector.broadcast %cst_15 : f32 to vector<1x128xf32>
    %33 = arith.mulf %31, %32 : vector<1x128xf32>
    %34 = vector.broadcast %33 : vector<1x128xf32> to vector<8x128xf32>
    %35 = arith.subf %29, %34 : vector<8x128xf32>
    %36 = arith.mulf %35, %35 : vector<8x128xf32>
    %cst_16 = arith.constant dense<0.000000e+00> : vector<128xf32>
    %37 = vector.multi_reduction <add>, %36, %cst_16 [0] : vector<8x128xf32> to vector<128xf32>
    %38 = vector.shape_cast %37 : vector<128xf32> to vector<1x128xf32>
    %cst_17 = arith.constant 1.250000e-01 : f32
    %39 = vector.broadcast %cst_17 : f32 to vector<1x128xf32>
    %40 = arith.mulf %38, %39 : vector<1x128xf32>
    %c0_18 = arith.constant 0 : index
    %c128 = arith.constant 128 : index
    %41 = vector.load %arg2[%c0_18, %c128] : memref<3x1152xf32, #tpu.memory_space<vmem>>, vector<1x128xf32>
    %c1_19 = arith.constant 1 : index
    %c128_20 = arith.constant 128 : index
    %42 = vector.load %arg2[%c1_19, %c128_20] : memref<3x1152xf32, #tpu.memory_space<vmem>>, vector<1x128xf32>
    %cst_21 = arith.constant 9.99999974E-6 : f32
    %43 = vector.broadcast %cst_21 : f32 to vector<1x128xf32>
    %44 = arith.addf %40, %43 : vector<1x128xf32>
    %45 = math.rsqrt %44 : vector<1x128xf32>
    %46 = arith.mulf %41, %45 : vector<1x128xf32>
    %47 = vector.broadcast %46 : vector<1x128xf32> to vector<8x128xf32>
    %48 = arith.mulf %35, %47 : vector<8x128xf32>
    %49 = vector.broadcast %42 : vector<1x128xf32> to vector<8x128xf32>
    %50 = arith.addf %48, %49 : vector<8x128xf32>
    %cst_22 = arith.constant 0.000000e+00 : f32
    %51 = vector.broadcast %cst_22 : f32 to vector<8x128xf32>
    %52 = arith.maximumf %50, %51 : vector<8x128xf32>
    %c96 = arith.constant 96 : index
    %c0_23 = arith.constant 0 : index
    %53 = vector.load %arg1[%c96, %c0_23] : memref<296x128xf32, #tpu.memory_space<vmem>>, vector<32x128xf32>
    %54 = vector.extract_strided_slice %52 {offsets = [0, 0], sizes = [8, 32], strides = [1, 1]} : vector<8x128xf32> to vector<8x32xf32>
    %cst_24 = arith.constant dense<0.000000e+00> : vector<8x128xf32>
    %55 = tpu.matmul %54, %53, %cst_24 {dimension_numbers = #tpu.dot_dimension_numbers<[1], [0], [0], [1], [0, 0, 1, 1], [], []>} : vector<8x32xf32>, vector<32x128xf32>, vector<8x128xf32> -> vector<8x128xf32>
    %cst_25 = arith.constant dense<0.000000e+00> : vector<128xf32>
    %56 = vector.multi_reduction <add>, %55, %cst_25 [0] : vector<8x128xf32> to vector<128xf32>
    %57 = vector.shape_cast %56 : vector<128xf32> to vector<1x128xf32>
    %cst_26 = arith.constant 1.250000e-01 : f32
    %58 = vector.broadcast %cst_26 : f32 to vector<1x128xf32>
    %59 = arith.mulf %57, %58 : vector<1x128xf32>
    %60 = vector.broadcast %59 : vector<1x128xf32> to vector<8x128xf32>
    %61 = arith.subf %55, %60 : vector<8x128xf32>
    %62 = arith.mulf %61, %61 : vector<8x128xf32>
    %cst_27 = arith.constant dense<0.000000e+00> : vector<128xf32>
    %63 = vector.multi_reduction <add>, %62, %cst_27 [0] : vector<8x128xf32> to vector<128xf32>
    %64 = vector.shape_cast %63 : vector<128xf32> to vector<1x128xf32>
    %cst_28 = arith.constant 1.250000e-01 : f32
    %65 = vector.broadcast %cst_28 : f32 to vector<1x128xf32>
    %66 = arith.mulf %64, %65 : vector<1x128xf32>
    %c0_29 = arith.constant 0 : index
    %c256 = arith.constant 256 : index
    %67 = vector.load %arg2[%c0_29, %c256] : memref<3x1152xf32, #tpu.memory_space<vmem>>, vector<1x128xf32>
    %c1_30 = arith.constant 1 : index
    %c256_31 = arith.constant 256 : index
    %68 = vector.load %arg2[%c1_30, %c256_31] : memref<3x1152xf32, #tpu.memory_space<vmem>>, vector<1x128xf32>
    %cst_32 = arith.constant 9.99999974E-6 : f32
    %69 = vector.broadcast %cst_32 : f32 to vector<1x128xf32>
    %70 = arith.addf %66, %69 : vector<1x128xf32>
    %71 = math.rsqrt %70 : vector<1x128xf32>
    %72 = arith.mulf %67, %71 : vector<1x128xf32>
    %73 = vector.broadcast %72 : vector<1x128xf32> to vector<8x128xf32>
    %74 = arith.mulf %61, %73 : vector<8x128xf32>
    %75 = vector.broadcast %68 : vector<1x128xf32> to vector<8x128xf32>
    %76 = arith.addf %74, %75 : vector<8x128xf32>
    %cst_33 = arith.constant 0.000000e+00 : f32
    %77 = vector.broadcast %cst_33 : f32 to vector<8x128xf32>
    %78 = arith.maximumf %76, %77 : vector<8x128xf32>
    %c128_34 = arith.constant 128 : index
    %c0_35 = arith.constant 0 : index
    %79 = vector.load %arg1[%c128_34, %c0_35] : memref<296x128xf32, #tpu.memory_space<vmem>>, vector<32x128xf32>
    %80 = vector.extract_strided_slice %78 {offsets = [0, 0], sizes = [8, 32], strides = [1, 1]} : vector<8x128xf32> to vector<8x32xf32>
    %cst_36 = arith.constant dense<0.000000e+00> : vector<8x128xf32>
    %81 = tpu.matmul %80, %79, %cst_36 {dimension_numbers = #tpu.dot_dimension_numbers<[1], [0], [0], [1], [0, 0, 1, 1], [], []>} : vector<8x32xf32>, vector<32x128xf32>, vector<8x128xf32> -> vector<8x128xf32>
    %cst_37 = arith.constant dense<0.000000e+00> : vector<128xf32>
    %82 = vector.multi_reduction <add>, %81, %cst_37 [0] : vector<8x128xf32> to vector<128xf32>
    %83 = vector.shape_cast %82 : vector<128xf32> to vector<1x128xf32>
    %cst_38 = arith.constant 1.250000e-01 : f32
    %84 = vector.broadcast %cst_38 : f32 to vector<1x128xf32>
    %85 = arith.mulf %83, %84 : vector<1x128xf32>
    %86 = vector.broadcast %85 : vector<1x128xf32> to vector<8x128xf32>
    %87 = arith.subf %81, %86 : vector<8x128xf32>
    %88 = arith.mulf %87, %87 : vector<8x128xf32>
    %cst_39 = arith.constant dense<0.000000e+00> : vector<128xf32>
    %89 = vector.multi_reduction <add>, %88, %cst_39 [0] : vector<8x128xf32> to vector<128xf32>
    %90 = vector.shape_cast %89 : vector<128xf32> to vector<1x128xf32>
    %cst_40 = arith.constant 1.250000e-01 : f32
    %91 = vector.broadcast %cst_40 : f32 to vector<1x128xf32>
    %92 = arith.mulf %90, %91 : vector<1x128xf32>
    %c0_41 = arith.constant 0 : index
    %c384 = arith.constant 384 : index
    %93 = vector.load %arg2[%c0_41, %c384] : memref<3x1152xf32, #tpu.memory_space<vmem>>, vector<1x128xf32>
    %c1_42 = arith.constant 1 : index
    %c384_43 = arith.constant 384 : index
    %94 = vector.load %arg2[%c1_42, %c384_43] : memref<3x1152xf32, #tpu.memory_space<vmem>>, vector<1x128xf32>
    %cst_44 = arith.constant 9.99999974E-6 : f32
    %95 = vector.broadcast %cst_44 : f32 to vector<1x128xf32>
    %96 = arith.addf %92, %95 : vector<1x128xf32>
    %97 = math.rsqrt %96 : vector<1x128xf32>
    %98 = arith.mulf %93, %97 : vector<1x128xf32>
    %99 = vector.broadcast %98 : vector<1x128xf32> to vector<8x128xf32>
    %100 = arith.mulf %87, %99 : vector<8x128xf32>
    %101 = vector.broadcast %94 : vector<1x128xf32> to vector<8x128xf32>
    %102 = arith.addf %100, %101 : vector<8x128xf32>
    %c160 = arith.constant 160 : index
    %c0_45 = arith.constant 0 : index
    %103 = vector.load %arg1[%c160, %c0_45] : memref<296x128xf32, #tpu.memory_space<vmem>>, vector<16x128xf32>
    %104 = vector.extract_strided_slice %102 {offsets = [0, 0], sizes = [8, 16], strides = [1, 1]} : vector<8x128xf32> to vector<8x16xf32>
    %cst_46 = arith.constant dense<0.000000e+00> : vector<8x128xf32>
    %105 = tpu.matmul %104, %103, %cst_46 {dimension_numbers = #tpu.dot_dimension_numbers<[1], [0], [0], [1], [0, 0, 1, 1], [], []>} : vector<8x16xf32>, vector<16x128xf32>, vector<8x128xf32> -> vector<8x128xf32>
    %cst_47 = arith.constant dense<0.000000e+00> : vector<128xf32>
    %106 = vector.multi_reduction <add>, %105, %cst_47 [0] : vector<8x128xf32> to vector<128xf32>
    %107 = vector.shape_cast %106 : vector<128xf32> to vector<1x128xf32>
    %cst_48 = arith.constant 1.250000e-01 : f32
    %108 = vector.broadcast %cst_48 : f32 to vector<1x128xf32>
    %109 = arith.mulf %107, %108 : vector<1x128xf32>
    %110 = vector.broadcast %109 : vector<1x128xf32> to vector<8x128xf32>
    %111 = arith.subf %105, %110 : vector<8x128xf32>
    %112 = arith.mulf %111, %111 : vector<8x128xf32>
    %cst_49 = arith.constant dense<0.000000e+00> : vector<128xf32>
    %113 = vector.multi_reduction <add>, %112, %cst_49 [0] : vector<8x128xf32> to vector<128xf32>
    %114 = vector.shape_cast %113 : vector<128xf32> to vector<1x128xf32>
    %cst_50 = arith.constant 1.250000e-01 : f32
    %115 = vector.broadcast %cst_50 : f32 to vector<1x128xf32>
    %116 = arith.mulf %114, %115 : vector<1x128xf32>
    %c0_51 = arith.constant 0 : index
    %c512 = arith.constant 512 : index
    %117 = vector.load %arg2[%c0_51, %c512] : memref<3x1152xf32, #tpu.memory_space<vmem>>, vector<1x128xf32>
    %c1_52 = arith.constant 1 : index
    %c512_53 = arith.constant 512 : index
    %118 = vector.load %arg2[%c1_52, %c512_53] : memref<3x1152xf32, #tpu.memory_space<vmem>>, vector<1x128xf32>
    %cst_54 = arith.constant 9.99999974E-6 : f32
    %119 = vector.broadcast %cst_54 : f32 to vector<1x128xf32>
    %120 = arith.addf %116, %119 : vector<1x128xf32>
    %121 = math.rsqrt %120 : vector<1x128xf32>
    %122 = arith.mulf %117, %121 : vector<1x128xf32>
    %123 = vector.broadcast %122 : vector<1x128xf32> to vector<8x128xf32>
    %124 = arith.mulf %111, %123 : vector<8x128xf32>
    %125 = vector.broadcast %118 : vector<1x128xf32> to vector<8x128xf32>
    %126 = arith.addf %124, %125 : vector<8x128xf32>
    %c176 = arith.constant 176 : index
    %c0_55 = arith.constant 0 : index
    %127 = vector.load %arg1[%c176, %c0_55] : memref<296x128xf32, #tpu.memory_space<vmem>>, vector<16x128xf32>
    %128 = vector.extract_strided_slice %126 {offsets = [0, 0], sizes = [8, 16], strides = [1, 1]} : vector<8x128xf32> to vector<8x16xf32>
    %cst_56 = arith.constant dense<0.000000e+00> : vector<8x128xf32>
    %129 = tpu.matmul %128, %127, %cst_56 {dimension_numbers = #tpu.dot_dimension_numbers<[1], [0], [0], [1], [0, 0, 1, 1], [], []>} : vector<8x16xf32>, vector<16x128xf32>, vector<8x128xf32> -> vector<8x128xf32>
    %cst_57 = arith.constant dense<0.000000e+00> : vector<128xf32>
    %130 = vector.multi_reduction <add>, %129, %cst_57 [0] : vector<8x128xf32> to vector<128xf32>
    %131 = vector.shape_cast %130 : vector<128xf32> to vector<1x128xf32>
    %cst_58 = arith.constant 1.250000e-01 : f32
    %132 = vector.broadcast %cst_58 : f32 to vector<1x128xf32>
    %133 = arith.mulf %131, %132 : vector<1x128xf32>
    %134 = vector.broadcast %133 : vector<1x128xf32> to vector<8x128xf32>
    %135 = arith.subf %129, %134 : vector<8x128xf32>
    %136 = arith.mulf %135, %135 : vector<8x128xf32>
    %cst_59 = arith.constant dense<0.000000e+00> : vector<128xf32>
    %137 = vector.multi_reduction <add>, %136, %cst_59 [0] : vector<8x128xf32> to vector<128xf32>
    %138 = vector.shape_cast %137 : vector<128xf32> to vector<1x128xf32>
    %cst_60 = arith.constant 1.250000e-01 : f32
    %139 = vector.broadcast %cst_60 : f32 to vector<1x128xf32>
    %140 = arith.mulf %138, %139 : vector<1x128xf32>
    %c0_61 = arith.constant 0 : index
    %c640 = arith.constant 640 : index
    %141 = vector.load %arg2[%c0_61, %c640] : memref<3x1152xf32, #tpu.memory_space<vmem>>, vector<1x128xf32>
    %c1_62 = arith.constant 1 : index
    %c640_63 = arith.constant 640 : index
    %142 = vector.load %arg2[%c1_62, %c640_63] : memref<3x1152xf32, #tpu.memory_space<vmem>>, vector<1x128xf32>
    %cst_64 = arith.constant 9.99999974E-6 : f32
    %143 = vector.broadcast %cst_64 : f32 to vector<1x128xf32>
    %144 = arith.addf %140, %143 : vector<1x128xf32>
    %145 = math.rsqrt %144 : vector<1x128xf32>
    %146 = arith.mulf %141, %145 : vector<1x128xf32>
    %147 = vector.broadcast %146 : vector<1x128xf32> to vector<8x128xf32>
    %148 = arith.mulf %135, %147 : vector<8x128xf32>
    %149 = vector.broadcast %142 : vector<1x128xf32> to vector<8x128xf32>
    %150 = arith.addf %148, %149 : vector<8x128xf32>
    %c0_65 = arith.constant 0 : index
    %c128_66 = arith.constant 128 : index
    %151 = vector.load %arg3[%c0_65, %c128_66] : memref<8x256xf32, #tpu.memory_space<vmem>>, vector<8x128xf32>
    tpu.vector_store %arg3[%c0_65, %c128_66], %150 {strides = array<i32>} : memref<8x256xf32, #tpu.memory_space<vmem>>, vector<8x128xf32>,
    %c192 = arith.constant 192 : index
    %c0_67 = arith.constant 0 : index
    %152 = vector.load %arg1[%c192, %c0_67] : memref<296x128xf32, #tpu.memory_space<vmem>>, vector<8x128xf32>
    %153 = vector.extract_strided_slice %150 {offsets = [0, 0], sizes = [8, 8], strides = [1, 1]} : vector<8x128xf32> to vector<8x8xf32>
    %cst_68 = arith.constant dense<0.000000e+00> : vector<8x128xf32>
    %154 = tpu.matmul %153, %152, %cst_68 {dimension_numbers = #tpu.dot_dimension_numbers<[1], [0], [0], [1], [0, 0, 1, 1], [], []>} : vector<8x8xf32>, vector<8x128xf32>, vector<8x128xf32> -> vector<8x128xf32>
    %cst_69 = arith.constant dense<0.000000e+00> : vector<128xf32>
    %155 = vector.multi_reduction <add>, %154, %cst_69 [0] : vector<8x128xf32> to vector<128xf32>
    %156 = vector.shape_cast %155 : vector<128xf32> to vector<1x128xf32>
    %cst_70 = arith.constant 1.250000e-01 : f32
    %157 = vector.broadcast %cst_70 : f32 to vector<1x128xf32>
    %158 = arith.mulf %156, %157 : vector<1x128xf32>
    %159 = vector.broadcast %158 : vector<1x128xf32> to vector<8x128xf32>
    %160 = arith.subf %154, %159 : vector<8x128xf32>
    %161 = arith.mulf %160, %160 : vector<8x128xf32>
    %cst_71 = arith.constant dense<0.000000e+00> : vector<128xf32>
    %162 = vector.multi_reduction <add>, %161, %cst_71 [0] : vector<8x128xf32> to vector<128xf32>
    %163 = vector.shape_cast %162 : vector<128xf32> to vector<1x128xf32>
    %cst_72 = arith.constant 1.250000e-01 : f32
    %164 = vector.broadcast %cst_72 : f32 to vector<1x128xf32>
    %165 = arith.mulf %163, %164 : vector<1x128xf32>
    %c0_73 = arith.constant 0 : index
    %c768 = arith.constant 768 : index
    %166 = vector.load %arg2[%c0_73, %c768] : memref<3x1152xf32, #tpu.memory_space<vmem>>, vector<1x128xf32>
    %c1_74 = arith.constant 1 : index
    %c768_75 = arith.constant 768 : index
    %167 = vector.load %arg2[%c1_74, %c768_75] : memref<3x1152xf32, #tpu.memory_space<vmem>>, vector<1x128xf32>
    %cst_76 = arith.constant 9.99999974E-6 : f32
    %168 = vector.broadcast %cst_76 : f32 to vector<1x128xf32>
    %169 = arith.addf %165, %168 : vector<1x128xf32>
    %170 = math.rsqrt %169 : vector<1x128xf32>
    %171 = arith.mulf %166, %170 : vector<1x128xf32>
    %172 = vector.broadcast %171 : vector<1x128xf32> to vector<8x128xf32>
    %173 = arith.mulf %160, %172 : vector<8x128xf32>
    %174 = vector.broadcast %167 : vector<1x128xf32> to vector<8x128xf32>
    %175 = arith.addf %173, %174 : vector<8x128xf32>
    %cst_77 = arith.constant 0.000000e+00 : f32
    %176 = vector.broadcast %cst_77 : f32 to vector<8x128xf32>
    %177 = arith.maximumf %175, %176 : vector<8x128xf32>
    %c200 = arith.constant 200 : index
    %c0_78 = arith.constant 0 : index
    %178 = vector.load %arg1[%c200, %c0_78] : memref<296x128xf32, #tpu.memory_space<vmem>>, vector<32x128xf32>
    %179 = vector.extract_strided_slice %177 {offsets = [0, 0], sizes = [8, 32], strides = [1, 1]} : vector<8x128xf32> to vector<8x32xf32>
    %cst_79 = arith.constant dense<0.000000e+00> : vector<8x128xf32>
    %180 = tpu.matmul %179, %178, %cst_79 {dimension_numbers = #tpu.dot_dimension_numbers<[1], [0], [0], [1], [0, 0, 1, 1], [], []>} : vector<8x32xf32>, vector<32x128xf32>, vector<8x128xf32> -> vector<8x128xf32>
    %cst_80 = arith.constant dense<0.000000e+00> : vector<128xf32>
    %181 = vector.multi_reduction <add>, %180, %cst_80 [0] : vector<8x128xf32> to vector<128xf32>
    %182 = vector.shape_cast %181 : vector<128xf32> to vector<1x128xf32>
    %cst_81 = arith.constant 1.250000e-01 : f32
    %183 = vector.broadcast %cst_81 : f32 to vector<1x128xf32>
    %184 = arith.mulf %182, %183 : vector<1x128xf32>
    %185 = vector.broadcast %184 : vector<1x128xf32> to vector<8x128xf32>
    %186 = arith.subf %180, %185 : vector<8x128xf32>
    %187 = arith.mulf %186, %186 : vector<8x128xf32>
    %cst_82 = arith.constant dense<0.000000e+00> : vector<128xf32>
    %188 = vector.multi_reduction <add>, %187, %cst_82 [0] : vector<8x128xf32> to vector<128xf32>
    %189 = vector.shape_cast %188 : vector<128xf32> to vector<1x128xf32>
    %cst_83 = arith.constant 1.250000e-01 : f32
    %190 = vector.broadcast %cst_83 : f32 to vector<1x128xf32>
    %191 = arith.mulf %189, %190 : vector<1x128xf32>
    %c0_84 = arith.constant 0 : index
    %c896 = arith.constant 896 : index
    %192 = vector.load %arg2[%c0_84, %c896] : memref<3x1152xf32, #tpu.memory_space<vmem>>, vector<1x128xf32>
    %c1_85 = arith.constant 1 : index
    %c896_86 = arith.constant 896 : index
    %193 = vector.load %arg2[%c1_85, %c896_86] : memref<3x1152xf32, #tpu.memory_space<vmem>>, vector<1x128xf32>
    %cst_87 = arith.constant 9.99999974E-6 : f32
    %194 = vector.broadcast %cst_87 : f32 to vector<1x128xf32>
    %195 = arith.addf %191, %194 : vector<1x128xf32>
    %196 = math.rsqrt %195 : vector<1x128xf32>
    %197 = arith.mulf %192, %196 : vector<1x128xf32>
    %198 = vector.broadcast %197 : vector<1x128xf32> to vector<8x128xf32>
    %199 = arith.mulf %186, %198 : vector<8x128xf32>
    %200 = vector.broadcast %193 : vector<1x128xf32> to vector<8x128xf32>
    %201 = arith.addf %199, %200 : vector<8x128xf32>
    %cst_88 = arith.constant 0.000000e+00 : f32
    %202 = vector.broadcast %cst_88 : f32 to vector<8x128xf32>
    %203 = arith.maximumf %201, %202 : vector<8x128xf32>
    %c232 = arith.constant 232 : index
    %c0_89 = arith.constant 0 : index
    %204 = vector.load %arg1[%c232, %c0_89] : memref<296x128xf32, #tpu.memory_space<vmem>>, vector<32x128xf32>
    %205 = vector.extract_strided_slice %203 {offsets = [0, 0], sizes = [8, 32], strides = [1, 1]} : vector<8x128xf32> to vector<8x32xf32>
    %cst_90 = arith.constant dense<0.000000e+00> : vector<8x128xf32>
    %206 = tpu.matmul %205, %204, %cst_90 {dimension_numbers = #tpu.dot_dimension_numbers<[1], [0], [0], [1], [0, 0, 1, 1], [], []>} : vector<8x32xf32>, vector<32x128xf32>, vector<8x128xf32> -> vector<8x128xf32>
    %cst_91 = arith.constant dense<0.000000e+00> : vector<128xf32>
    %207 = vector.multi_reduction <add>, %206, %cst_91 [0] : vector<8x128xf32> to vector<128xf32>
    %208 = vector.shape_cast %207 : vector<128xf32> to vector<1x128xf32>
    %cst_92 = arith.constant 1.250000e-01 : f32
    %209 = vector.broadcast %cst_92 : f32 to vector<1x128xf32>
    %210 = arith.mulf %208, %209 : vector<1x128xf32>
    %211 = vector.broadcast %210 : vector<1x128xf32> to vector<8x128xf32>
    %212 = arith.subf %206, %211 : vector<8x128xf32>
    %213 = arith.mulf %212, %212 : vector<8x128xf32>
    %cst_93 = arith.constant dense<0.000000e+00> : vector<128xf32>
    %214 = vector.multi_reduction <add>, %213, %cst_93 [0] : vector<8x128xf32> to vector<128xf32>
    %215 = vector.shape_cast %214 : vector<128xf32> to vector<1x128xf32>
    %cst_94 = arith.constant 1.250000e-01 : f32
    %216 = vector.broadcast %cst_94 : f32 to vector<1x128xf32>
    %217 = arith.mulf %215, %216 : vector<1x128xf32>
    %c0_95 = arith.constant 0 : index
    %c1024 = arith.constant 1024 : index
    %218 = vector.load %arg2[%c0_95, %c1024] : memref<3x1152xf32, #tpu.memory_space<vmem>>, vector<1x128xf32>
    %c1_96 = arith.constant 1 : index
    %c1024_97 = arith.constant 1024 : index
    %219 = vector.load %arg2[%c1_96, %c1024_97] : memref<3x1152xf32, #tpu.memory_space<vmem>>, vector<1x128xf32>
    %cst_98 = arith.constant 9.99999974E-6 : f32
    %220 = vector.broadcast %cst_98 : f32 to vector<1x128xf32>
    %221 = arith.addf %217, %220 : vector<1x128xf32>
    %222 = math.rsqrt %221 : vector<1x128xf32>
    %223 = arith.mulf %218, %222 : vector<1x128xf32>
    %224 = vector.broadcast %223 : vector<1x128xf32> to vector<8x128xf32>
    %225 = arith.mulf %212, %224 : vector<8x128xf32>
    %226 = vector.broadcast %219 : vector<1x128xf32> to vector<8x128xf32>
    %227 = arith.addf %225, %226 : vector<8x128xf32>
    %cst_99 = arith.constant 0.000000e+00 : f32
    %228 = vector.broadcast %cst_99 : f32 to vector<8x128xf32>
    %229 = arith.maximumf %227, %228 : vector<8x128xf32>
    %230 = vector.extract_strided_slice %229 {offsets = [0, 0], sizes = [8, 32], strides = [1, 1]} : vector<8x128xf32> to vector<8x32xf32>
    %c264 = arith.constant 264 : index
    %c0_100 = arith.constant 0 : index
    %231 = vector.load %arg1[%c264, %c0_100] : memref<296x128xf32, #tpu.memory_space<vmem>>, vector<32x128xf32>
    %cst_101 = arith.constant dense<0.000000e+00> : vector<8x128xf32>
    %232 = tpu.matmul %230, %231, %cst_101 {dimension_numbers = #tpu.dot_dimension_numbers<[1], [0], [0], [1], [0, 0, 1, 1], [], []>} : vector<8x32xf32>, vector<32x128xf32>, vector<8x128xf32> -> vector<8x128xf32>
    %c2 = arith.constant 2 : index
    %c0_102 = arith.constant 0 : index
    %233 = vector.load %arg2[%c2, %c0_102] : memref<3x1152xf32, #tpu.memory_space<vmem>>, vector<1x128xf32>
    %234 = vector.broadcast %233 : vector<1x128xf32> to vector<8x128xf32>
    %235 = arith.addf %232, %234 : vector<8x128xf32>
    %c0_103 = arith.constant 0 : index
    %c0_104 = arith.constant 0 : index
    %236 = vector.load %arg3[%c0_103, %c0_104] : memref<8x256xf32, #tpu.memory_space<vmem>>, vector<8x128xf32>
    tpu.vector_store %arg3[%c0_103, %c0_104], %235 {strides = array<i32>} : memref<8x256xf32, #tpu.memory_space<vmem>>, vector<8x128xf32>,
    return
  }
}

</mosaic_0001>

<bundles_post_ra>
// kernel: _forward.1
= control target key start
LH: loop header
LB: loop body
LE: loop exit
PB: predicated region body
PF: predicated region fallthrough
CT: control target
= control target key end

     0   :  { %8 = vsyncpa [#allocation3], 0  ;;  %s1313_s12 = smov [#allocation2]   ;;  %s1483_s0 = inlined_call_operand.vmem [shape: f32[8,128], index: 0, kind: input, shape index: {}]   ;;  %s1484_s1 = inlined_call_operand.hbm [shape: f32[296,128], index: 1, kind: input, shape index: {}]   ;;  %s1485_s2 = inlined_call_operand.vmem [shape: f32[3,1152], index: 2, kind: input, shape index: {}]   ;;  %s1486_s3 = inlined_call_operand.vmem [shape: f32[8,256], index: 3, kind: output, shape index: {}]  }
   0x1   :  { %s16_s13 = sshll.u32 %s1313_s12, 4  ;;  %s17_s13 = int_to_ptr.vmem [resolvable:$true] %s16_s13 }
   0x2   :  { %s1299_s14 = scalar_lea.vmem %s17_s13, 4736  ;;  %p1304_p1 = scmp.lt.s32.totalorder %s17_s13, %s17_s13 }
   0x3   :  { %p1300_p0 = scmp.ne.s32.totalorder %s17_s13, %s1299_s14  ;;  %p1305_p2 = scmp.lt.s32.totalorder %s1299_s14, %s1299_s14 }
   0x5   :  { %p1306_p3 = por %p1305_p2, %p1304_p1 }
   0x7   :  { %p1307_p4 = pnand %p1306_p3, %p1300_p0 }
   0x9   :  { %1310 = shalt.err (!%p1307_p4)
}
   0xa   :  { %s1314_s15 = smov 128   ;;  %s1315_s16 = smov 8  }
   0xb   :  { %22 = dma.hbm_to_vmem [thread:$0]  %s1484_s1, 4736, %s17_s13, [#allocation3], %s1314_s15, %s1314_s15, %s1315_s16  }
   0xc   :  { %1311 = dma.done.wait [#allocation3], 4736  }
   0xd   :  { %1312 = vsyncadd [#allocation3], 4294962560  ;;  %v1316_v0 = vmov 0.0   ;;  %vm1317_vm0 = vmmov 0   ;;  %v36_v1 = vld [vmem:[#allocation2 + $0x38] sm:$0xff]  ;;  %v35_v2 = vld [vmem:[#allocation2 + $0x30] sm:$0xff]  ;;  %v132_v33 = vlaneseq }
   0xe   :  { %1164 = vmatprep.subr.mxu0 %v1316_v0  ;;  %1180 = vmatprep.mubr.msk.f32.mxu0 %vm1317_vm0, %v1316_v0  ;;  %v34_v3 = vld [vmem:[#allocation2 + $0x28] sm:$0xff]  ;;  %v33_v4 = vld [vmem:[#allocation2 + $0x20] sm:$0xff]  ;;  %v32_v5 = vld [vmem:[#allocation2 + $0x18] sm:$0xff]  ;;  %vm37_vm1 = vcmask 523264   ;;  %vm147_vm2 = vcmask 261120   ;;  %vm472_vm3 = vcmask 130048  }
   0xf   :  { %1183 = vmatprep.subr.mxu1 %v1316_v0  ;;  %1191 = vmatprep.mubr.msk.f32.mxu1 %vm1317_vm0, %v1316_v0  ;;  %v31_v6 = vld [vmem:[#allocation2 + $0x10] sm:$0xff]  ;;  %v30_v7 = vld [vmem:[#allocation2 + $0x8] sm:$0xff]  ;;  %v29_v8 = vld [vmem:[#allocation2] sm:$0xff]  ;;  %v133_v34 = vshrl.u32 %v132_v33, 7  ;;  %vm685_vm4 = vcmask 64512  }
  0x10   :  { %1165 = vmatpush3.msra.mxu0 %v36_v1  ;;  %v28_v9 = vld [vmem:[%s1483_s0] sm:$0xff]  ;;  %v146_v10 = vld [vmem:[#allocation2 + $0x58] sm:$0xff]  ;;  %v145_v11 = vld [vmem:[#allocation2 + $0x50] sm:$0xff] }
  0x11   :  { %1166 = vmatprep.subr.mxu0 %v1316_v0  ;;  %1184 = vmatpush3.msra.mxu1 %v146_v10  ;;  %v144_v12 = vld [vmem:[#allocation2 + $0x48] sm:$0xff]  ;;  %v143_v13 = vld [vmem:[#allocation2 + $0x40] sm:$0xff]  ;;  %v1367_v36 = vsub.s32 0, %v133_v34  ;;  %v256_v44 = vld [vmem:[#allocation2 + $0x78] sm:$0xff] }
  0x12   :  { %1167 = vmatpush3.msra.mxu0 %v35_v2  ;;  %1185 = vmatprep.subr.mxu1 %v1316_v0  ;;  %v127_v35 = vld [vmem:[%s1485_s2] sm:$0x1]  ;;  %v1098_v40 = vld [vmem:[%s1485_s2 + $0x1] ss:$0 sm:$0xff]  ;;  %v255_v45 = vld [vmem:[#allocation2 + $0x70] sm:$0xff] }
  0x13   :  { %1168 = vmatprep.subr.mxu0 %v1316_v0  ;;  %1186 = vmatpush3.msra.mxu1 %v145_v11  ;;  %v254_v46 = vld [vmem:[#allocation2 + $0x68] sm:$0xff]  ;;  %v253_v47 = vld [vmem:[#allocation2 + $0x60] sm:$0xff] }
  0x14   :  { %1169 = vmatpush3.msra.mxu0 %v34_v3  ;;  %1187 = vmatprep.subr.mxu1 %v1316_v0 }
  0x15   :  { %1170 = vmatprep.subr.mxu0 %v1316_v0  ;;  %1188 = vmatpush3.msra.mxu1 %v144_v12  ;;  %v365_v12 = vld [vmem:[#allocation2 + $0x98] sm:$0xff] }
  0x16   :  { %1171 = vmatpush3.msra.mxu0 %v33_v4  ;;  %1189 = vmatprep.subr.mxu1 %v1316_v0  ;;  %v237_v4 = vld [vmem:[%s1485_s2 + $0x4] sm:$0x1] }
  0x17   :  { %1172 = vmatprep.subr.mxu0 %v1316_v0  ;;  %1190 = vmatpush3.msra.mxu1 %v143_v13  ;;  %v364_v13 = vld [vmem:[#allocation2 + $0x90] sm:$0xff] }
  0x18   :  { %1173 = vmatpush3.msra.mxu0 %v32_v5  ;;  %1194 = vmatprep.subr.mxu1 %v1316_v0 }
  0x19   :  { %1174 = vmatprep.subr.mxu0 %v1316_v0 }
  0x1a   :  { %1175 = vmatpush3.msra.mxu0 %v31_v6 }
  0x1b   :  { %1176 = vmatprep.subr.mxu0 %v1316_v0 }
  0x1c   :  { %1177 = vmatpush3.msra.mxu0 %v30_v7 }
  0x1d   :  { %1178 = vmatprep.subr.mxu0 %v1316_v0 }
  0x1e   :  { %1179 = vmatpush3.msra.mxu0 %v29_v8  ;;  %v1100_v8 = vld [vmem:[%s1485_s2 + $0x5] ss:$0 sm:$0xff] }
  0x1f   :  { %1181 = vmatmul.mubr.msk.f32.vlgmr.msra.gmra.mxu0 %vm37_vm1, %v28_v9  ;;  %1205 = vmatprep.subr.mxu0 %v1316_v0 }
  0x20   :  { %1213 = vmatprep.mubr.msk.f32.mxu0 %vm1317_vm0, %v1316_v0  ;;  %1206 = vmatpush3.msra.mxu0 %v365_v12 }
  0x21   :  { %1207 = vmatprep.subr.mxu0 %v1316_v0 }
  0x22   :  { %1208 = vmatpush3.msra.mxu0 %v364_v13 }
  0x23   :  { %1209 = vmatprep.subr.mxu0 %v1316_v0 }
  0xdf   :  { %v107_v14 = vpop.f32.mrf.mxu0 }
  0xe0   :  { %v111_v15 = vrot.slane %v107_v14, 4 }
  0xe1   :  { %v1182_v16 = vpop.f32.mrf.mxu0 }
  0xe2   :  { %v112_v17 = vadd.f32 %v111_v15, %v107_v14  ;;  %v362_v15 = vld [vmem:[#allocation2 + $0x80] sm:$0xff] }
  0xe4   :  { %v113_v18 = vrot.slane %v112_v17, 2 }
  0xe6   :  { %v114_v19 = vadd.f32 %v113_v18, %v112_v17 }
  0xe8   :  { %v115_v20 = vrot.slane %v114_v19, 1 }
  0xea   :  { %v116_v21 = vadd.f32 %v115_v20, %v114_v19 }
  0xec   :  { %v117_v22 = vmul.f32 0.125, %v116_v21 }
  0xee   :  { %v118_v23 = vsub.f32 %v107_v14, %v117_v22  ;;  %v363_v14 = vld [vmem:[#allocation2 + $0x88] sm:$0xff] }
  0xef   :  { %1210 = vmatpush3.msra.mxu0 %v363_v14 }
  0xf0   :  { %v119_v24 = vmul.f32 %v118_v23, %v118_v23  ;;  %1211 = vmatprep.subr.mxu0 %v1316_v0 }
  0xf1   :  { %1212 = vmatpush3.msra.mxu0 %v362_v15 }
  0xf2   :  { %v120_v25 = vrot.slane %v119_v24, 4  ;;  %1230 = vmatprep.subr.mxu0 %v1316_v0 }
  0xf4   :  { %v121_v26 = vadd.f32 %v120_v25, %v119_v24 }
  0xf6   :  { %v122_v27 = vrot.slane %v121_v26, 2 }
  0xf8   :  { %v123_v28 = vadd.f32 %v122_v27, %v121_v26 }
  0xfa   :  { %v124_v29 = vrot.slane %v123_v28, 1 }
  0xfc   :  { %v125_v30 = vadd.f32 %v124_v29, %v123_v28 }
  0xfe   :  { %v126_v31 = vmul.f32 0.125, %v125_v30 }
 0x100   :  { %v129_v32 = vadd.f32 1e-05, %v126_v31 }
 0x102   :  { %1273 = vrsqrt.f32 %v129_v32 }
 0x10f   :  { %v1274_v37 = vpop.eup %1273 }
 0x110   :  { %v131_v38 = vmul.f32 %v1274_v37, %v127_v35  ;;  %v346_v35 = vld [vmem:[%s1485_s2 + $0x8] sm:$0x1] }
 0x112   :  { %v135_v39 = vrot.slane %v131_v38, %v1367_v36 }
 0x114   :  { %v136_v41 = vmul.f32 %v135_v39, %v118_v23 }
 0x116   :  { %v141_v42 = vadd.f32 %v1098_v40, %v136_v41  ;;  %v1102_v40 = vld [vmem:[%s1485_s2 + $0x9] ss:$0 sm:$0xff] }
 0x118   :  { %v142_v43 = vmax.f32 %v141_v42, 0.0 }
 0x11a   :  { %1192 = vmatmul.mubr.msk.f32.vlgmr.msra.gmra.mxu1 %vm147_vm2, %v142_v43 }
 0x11b   :  { %1202 = vmatprep.mubr.msk.f32.mxu1 %vm1317_vm0, %v1316_v0  ;;  %1195 = vmatpush3.msra.mxu1 %v256_v44  ;;  %v471_v44 = vld [vmem:[#allocation2 + $0xa8] sm:$0xff] }
 0x11c   :  { %1196 = vmatprep.subr.mxu1 %v1316_v0 }
 0x11d   :  { %1197 = vmatpush3.msra.mxu1 %v255_v45  ;;  %v470_v45 = vld [vmem:[#allocation2 + $0xa0] sm:$0xff] }
 0x11e   :  { %1198 = vmatprep.subr.mxu1 %v1316_v0 }
 0x11f   :  { %1199 = vmatpush3.msra.mxu1 %v254_v46 }
 0x120   :  { %1200 = vmatprep.subr.mxu1 %v1316_v0 }
 0x121   :  { %1201 = vmatpush3.msra.mxu1 %v253_v47 }
 0x122   :  { %1216 = vmatprep.subr.mxu1 %v1316_v0 }
 0x1da   :  { %v217_v48 = vpop.f32.mrf.mxu1 }
 0x1db   :  { %v221_v49 = vrot.slane %v217_v48, 4 }
 0x1dc   :  { %v1193_v50 = vpop.f32.mrf.mxu1 }
 0x1dd   :  { %v222_v51 = vadd.f32 %v221_v49, %v217_v48 }
 0x1df   :  { %v223_v52 = vrot.slane %v222_v51, 2 }
 0x1e1   :  { %v224_v53 = vadd.f32 %v223_v52, %v222_v51 }
 0x1e3   :  { %v225_v54 = vrot.slane %v224_v53, 1 }
 0x1e5   :  { %v226_v55 = vadd.f32 %v225_v54, %v224_v53 }
 0x1e7   :  { %v227_v56 = vmul.f32 0.125, %v226_v55 }
 0x1e9   :  { %v228_v57 = vsub.f32 %v217_v48, %v227_v56 }
 0x1eb   :  { %v229_v58 = vmul.f32 %v228_v57, %v228_v57 }
 0x1ed   :  { %v230_v59 = vrot.slane %v229_v58, 4 }
 0x1ef   :  { %v231_v60 = vadd.f32 %v230_v59, %v229_v58 }
 0x1f1   :  { %v232_v61 = vrot.slane %v231_v60, 2 }
 0x1f3   :  { %v233_v62 = vadd.f32 %v232_v61, %v231_v60 }
 0x1f5   :  { %v234_v63 = vrot.slane %v233_v62, 1 }
 0x1f7   :  { %v235_v1 = vadd.f32 %v234_v63, %v233_v62 }
 0x1f9   :  { %v236_v2 = vmul.f32 0.125, %v235_v1 }
 0x1fb   :  { %v239_v3 = vadd.f32 1e-05, %v236_v2  ;;  %v455_v2 = vld [vmem:[%s1485_s2 + $0xc] sm:$0x1] }
 0x1fd   :  { %1275 = vrsqrt.f32 %v239_v3 }
 0x20a   :  { %v1276_v5 = vpop.eup %1275 }
 0x20b   :  { %v241_v6 = vmul.f32 %v1276_v5, %v237_v4 }
 0x20d   :  { %v245_v7 = vrot.slane %v241_v6, %v1367_v36  ;;  %v1104_v6 = vld [vmem:[%s1485_s2 + $0xd] ss:$0 sm:$0xff] }
 0x20f   :  { %v246_v9 = vmul.f32 %v245_v7, %v228_v57 }
 0x211   :  { %v251_v10 = vadd.f32 %v1100_v8, %v246_v9  ;;  %v578_v9 = vld [vmem:[#allocation2 + $0xb8] sm:$0xff] }
 0x213   :  { %v252_v11 = vmax.f32 %v251_v10, 0.0  ;;  %v577_v10 = vld [vmem:[#allocation2 + $0xb0] sm:$0xff] }
 0x215   :  { %1203 = vmatmul.mubr.msk.f32.vlgmr.msra.gmra.mxu1 %vm147_vm2, %v252_v11 }
 0x216   :  { %1220 = vmatprep.mubr.msk.f32.mxu1 %vm1317_vm0, %v1316_v0  ;;  %1217 = vmatpush3.msra.mxu1 %v471_v44 }
 0x217   :  { %1218 = vmatprep.subr.mxu1 %v1316_v0 }
 0x218   :  { %1219 = vmatpush3.msra.mxu1 %v470_v45 }
 0x219   :  { %1223 = vmatprep.subr.mxu1 %v1316_v0 }
 0x2d5   :  { %v326_v16 = vpop.f32.mrf.mxu1 }
 0x2d6   :  { %v330_v17 = vrot.slane %v326_v16, 4 }
 0x2d7   :  { %v1204_v18 = vpop.f32.mrf.mxu1 }
 0x2d8   :  { %v331_v19 = vadd.f32 %v330_v17, %v326_v16 }
 0x2da   :  { %v332_v20 = vrot.slane %v331_v19, 2 }
 0x2dc   :  { %v333_v21 = vadd.f32 %v332_v20, %v331_v19 }
 0x2de   :  { %v334_v22 = vrot.slane %v333_v21, 1 }
 0x2e0   :  { %v335_v23 = vadd.f32 %v334_v22, %v333_v21 }
 0x2e2   :  { %v336_v24 = vmul.f32 0.125, %v335_v23 }
 0x2e4   :  { %v337_v25 = vsub.f32 %v326_v16, %v336_v24 }
 0x2e6   :  { %v338_v26 = vmul.f32 %v337_v25, %v337_v25 }
 0x2e8   :  { %v339_v27 = vrot.slane %v338_v26, 4 }
 0x2ea   :  { %v340_v28 = vadd.f32 %v339_v27, %v338_v26 }
 0x2ec   :  { %v341_v29 = vrot.slane %v340_v28, 2 }
 0x2ee   :  { %v342_v30 = vadd.f32 %v341_v29, %v340_v28 }
 0x2f0   :  { %v343_v31 = vrot.slane %v342_v30, 1 }
 0x2f2   :  { %v344_v32 = vadd.f32 %v343_v31, %v342_v30  ;;  %v562_v30 = vld [vmem:[%s1485_s2 + $0x10] sm:$0x1] }
 0x2f4   :  { %v345_v33 = vmul.f32 0.125, %v344_v32 }
 0x2f6   :  { %v348_v34 = vadd.f32 1e-05, %v345_v33 }
 0x2f8   :  { %1277 = vrsqrt.f32 %v348_v34  ;;  %v1106_v34 = vld [vmem:[%s1485_s2 + $0x11] ss:$0 sm:$0xff] }
 0x305   :  { %v1278_v37 = vpop.eup %1277 }
 0x306   :  { %v350_v38 = vmul.f32 %v1278_v37, %v346_v35 }
 0x308   :  { %v354_v39 = vrot.slane %v350_v38, %v1367_v36  ;;  %v684_v38 = vld [vmem:[#allocation2 + $0xc0] sm:$0xff] }
 0x30a   :  { %v355_v41 = vmul.f32 %v354_v39, %v337_v25 }
 0x30c   :  { %v360_v42 = vadd.f32 %v1102_v40, %v355_v41 }
 0x30e   :  { %v361_v43 = vmax.f32 %v360_v42, 0.0 }
 0x310   :  { %1214 = vmatmul.mubr.msk.f32.vlgmr.msra.gmra.mxu0 %vm147_vm2, %v361_v43 }
 0x311   :  { %1232 = vmatprep.mubr.msk.f32.mxu0 %vm1317_vm0, %v1316_v0  ;;  %1231 = vmatpush3.msra.mxu0 %v684_v38 }
 0x312   :  { %1246 = vmatprep.subr.mxu0 %v1316_v0 }
 0x3d0   :  { %v435_v46 = vpop.f32.mrf.mxu0 }
 0x3d1   :  { %v439_v47 = vrot.slane %v435_v46, 4 }
 0x3d2   :  { %v1215_v48 = vpop.f32.mrf.mxu0 }
 0x3d3   :  { %v440_v49 = vadd.f32 %v439_v47, %v435_v46 }
 0x3d5   :  { %v441_v50 = vrot.slane %v440_v49, 2 }
 0x3d7   :  { %v442_v51 = vadd.f32 %v441_v50, %v440_v49 }
 0x3d9   :  { %v443_v52 = vrot.slane %v442_v51, 1 }
 0x3db   :  { %v444_v53 = vadd.f32 %v443_v52, %v442_v51 }
 0x3dd   :  { %v445_v54 = vmul.f32 0.125, %v444_v53 }
 0x3df   :  { %v446_v55 = vsub.f32 %v435_v46, %v445_v54 }
 0x3e1   :  { %v447_v56 = vmul.f32 %v446_v55, %v446_v55 }
 0x3e3   :  { %v448_v57 = vrot.slane %v447_v56, 4 }
 0x3e5   :  { %v449_v58 = vadd.f32 %v448_v57, %v447_v56 }
 0x3e7   :  { %v450_v59 = vrot.slane %v449_v58, 2 }
 0x3e9   :  { %v451_v60 = vadd.f32 %v450_v59, %v449_v58  ;;  %v668_v58 = vld [vmem:[%s1485_s2 + $0x14] sm:$0x1] }
 0x3eb   :  { %v452_v61 = vrot.slane %v451_v60, 1 }
 0x3ed   :  { %v453_v62 = vadd.f32 %v452_v61, %v451_v60 }
 0x3ef   :  { %v454_v63 = vmul.f32 0.125, %v453_v62  ;;  %v1108_v62 = vld [vmem:[%s1485_s2 + $0x15] ss:$0 sm:$0xff] }
 0x3f1   :  { %v457_v1 = vadd.f32 1e-05, %v454_v63 }
 0x3f3   :  { %1279 = vrsqrt.f32 %v457_v1 }
 0x400   :  { %v1280_v3 = vpop.eup %1279 }
 0x401   :  { %v459_v4 = vmul.f32 %v1280_v3, %v455_v2  ;;  %v794_v2 = vld [vmem:[#allocation2 + $0xe0] sm:$0xff]  ;;  %v793_v3 = vld [vmem:[#allocation2 + $0xd8] sm:$0xff] }
 0x403   :  { %v463_v5 = vrot.slane %v459_v4, %v1367_v36  ;;  %v792_v4 = vld [vmem:[#allocation2 + $0xd0] sm:$0xff] }
 0x405   :  { %v464_v7 = vmul.f32 %v463_v5, %v446_v55  ;;  %v791_v5 = vld [vmem:[#allocation2 + $0xc8] sm:$0xff] }
 0x407   :  { %v469_v8 = vadd.f32 %v1104_v6, %v464_v7 }
 0x409   :  { %1221 = vmatmul.mubr.msk.f32.vlgmr.msra.gmra.mxu1 %vm472_vm3, %v469_v8 }
 0x40a   :  { %1227 = vmatprep.mubr.msk.f32.mxu1 %vm1317_vm0, %v1316_v0  ;;  %1224 = vmatpush3.msra.mxu1 %v578_v9 }
 0x40b   :  { %1225 = vmatprep.subr.mxu1 %v1316_v0 }
 0x40c   :  { %1226 = vmatpush3.msra.mxu1 %v577_v10 }
 0x40d   :  { %1235 = vmatprep.subr.mxu1 %v1316_v0 }
 0x4c9   :  { %v542_v11 = vpop.f32.mrf.mxu1 }
 0x4ca   :  { %v546_v12 = vrot.slane %v542_v11, 4 }
 0x4cb   :  { %v1222_v13 = vpop.f32.mrf.mxu1 }
 0x4cc   :  { %v547_v14 = vadd.f32 %v546_v12, %v542_v11 }
 0x4ce   :  { %v548_v15 = vrot.slane %v547_v14, 2 }
 0x4d0   :  { %v549_v16 = vadd.f32 %v548_v15, %v547_v14 }
 0x4d2   :  { %v550_v17 = vrot.slane %v549_v16, 1 }
 0x4d4   :  { %v551_v18 = vadd.f32 %v550_v17, %v549_v16 }
 0x4d6   :  { %v552_v19 = vmul.f32 0.125, %v551_v18 }
 0x4d8   :  { %v553_v20 = vsub.f32 %v542_v11, %v552_v19 }
 0x4da   :  { %v554_v21 = vmul.f32 %v553_v20, %v553_v20 }
 0x4dc   :  { %v555_v22 = vrot.slane %v554_v21, 4 }
 0x4de   :  { %v556_v23 = vadd.f32 %v555_v22, %v554_v21 }
 0x4e0   :  { %v557_v24 = vrot.slane %v556_v23, 2 }
 0x4e2   :  { %v558_v25 = vadd.f32 %v557_v24, %v556_v23 }
 0x4e4   :  { %v559_v26 = vrot.slane %v558_v25, 1 }
 0x4e6   :  { %v560_v27 = vadd.f32 %v559_v26, %v558_v25  ;;  %v775_v25 = vld [vmem:[%s1485_s2 + $0x18] sm:$0x1] }
 0x4e8   :  { %v561_v28 = vmul.f32 0.125, %v560_v27 }
 0x4ea   :  { %v564_v29 = vadd.f32 1e-05, %v561_v28 }
 0x4ec   :  { %1281 = vrsqrt.f32 %v564_v29  ;;  %v1110_v29 = vld [vmem:[%s1485_s2 + $0x19] ss:$0 sm:$0xff] }
 0x4f9   :  { %v1282_v31 = vpop.eup %1281 }
 0x4fa   :  { %v566_v32 = vmul.f32 %v1282_v31, %v562_v30 }
 0x4fc   :  { %v570_v33 = vrot.slane %v566_v32, %v1367_v36 }
 0x4fe   :  { %v571_v35 = vmul.f32 %v570_v33, %v553_v20  ;;  %v903_v33 = vld [vmem:[#allocation2 + $0x100] sm:$0xff] }
 0x500   :  { %v576_v37 = vadd.f32 %v1106_v34, %v571_v35  ;;  %v902_v34 = vld [vmem:[#allocation2 + $0xf8] sm:$0xff]  ;;  %v901_v35 = vld [vmem:[#allocation2 + $0xf0] sm:$0xff] }
 0x502   :  { %1228 = vmatmul.mubr.msk.f32.vlgmr.msra.gmra.mxu1 %vm472_vm3, %v576_v37  ;;  %v900_v37 = vld [vmem:[#allocation2 + $0xe8] sm:$0xff] }
 0x503   :  { %1243 = vmatprep.mubr.msk.f32.mxu1 %vm1317_vm0, %v1316_v0  ;;  %1236 = vmatpush3.msra.mxu1 %v794_v2  ;;  %v1012_v2 = vld [vmem:[#allocation2 + $0x120] sm:$0xff] }
 0x504   :  { %1237 = vmatprep.subr.mxu1 %v1316_v0 }
 0x505   :  { %1238 = vmatpush3.msra.mxu1 %v793_v3  ;;  %v1011_v3 = vld [vmem:[#allocation2 + $0x118] sm:$0xff] }
 0x506   :  { %1239 = vmatprep.subr.mxu1 %v1316_v0 }
 0x507   :  { %1240 = vmatpush3.msra.mxu1 %v792_v4  ;;  %v1010_v4 = vld [vmem:[#allocation2 + $0x110] sm:$0xff] }
 0x508   :  { %1241 = vmatprep.subr.mxu1 %v1316_v0 }
 0x509   :  { %1242 = vmatpush3.msra.mxu1 %v791_v5  ;;  %v1009_v5 = vld [vmem:[#allocation2 + $0x108] sm:$0xff] }
 0x50a   :  { %1257 = vmatprep.subr.mxu1 %v1316_v0 }
 0x5c2   :  { %v648_v39 = vpop.f32.mrf.mxu1 }
 0x5c3   :  { %v652_v40 = vrot.slane %v648_v39, 4 }
 0x5c4   :  { %v1229_v41 = vpop.f32.mrf.mxu1 }
 0x5c5   :  { %v653_v42 = vadd.f32 %v652_v40, %v648_v39 }
 0x5c7   :  { %v654_v43 = vrot.slane %v653_v42, 2 }
 0x5c9   :  { %v655_v44 = vadd.f32 %v654_v43, %v653_v42 }
 0x5cb   :  { %v656_v45 = vrot.slane %v655_v44, 1 }
 0x5cd   :  { %v657_v46 = vadd.f32 %v656_v45, %v655_v44 }
 0x5cf   :  { %v658_v47 = vmul.f32 0.125, %v657_v46 }
 0x5d1   :  { %v659_v48 = vsub.f32 %v648_v39, %v658_v47 }
 0x5d3   :  { %v660_v49 = vmul.f32 %v659_v48, %v659_v48 }
 0x5d5   :  { %v661_v50 = vrot.slane %v660_v49, 4 }
 0x5d7   :  { %v662_v51 = vadd.f32 %v661_v50, %v660_v49 }
 0x5d9   :  { %v663_v52 = vrot.slane %v662_v51, 2 }
 0x5db   :  { %v664_v53 = vadd.f32 %v663_v52, %v662_v51 }
 0x5dd   :  { %v665_v54 = vrot.slane %v664_v53, 1 }
 0x5df   :  { %v666_v55 = vadd.f32 %v665_v54, %v664_v53 }
 0x5e1   :  { %v667_v56 = vmul.f32 0.125, %v666_v55 }
 0x5e3   :  { %v670_v57 = vadd.f32 1e-05, %v667_v56 }
 0x5e5   :  { %1283 = vrsqrt.f32 %v670_v57  ;;  %v884_v57 = vld [vmem:[%s1485_s2 + $0x1c] sm:$0x1] }
 0x5f2   :  { %v1284_v59 = vpop.eup %1283 }
 0x5f3   :  { %v672_v60 = vmul.f32 %v1284_v59, %v668_v58 }
 0x5f5   :  { %v676_v61 = vrot.slane %v672_v60, %v1367_v36 }
 0x5f7   :  { %v677_v63 = vmul.f32 %v676_v61, %v659_v48  ;;  %v1112_v61 = vld [vmem:[%s1485_s2 + $0x1d] ss:$0 sm:$0xff] }
 0x5f9   :  { %v682_v1 = vadd.f32 %v1108_v62, %v677_v63 }
 0x5fb   :  { %683 = vst [vmem:[%s1486_s3 + $0x8] sm:$0xff] %v682_v1  ;;  %1233 = vmatmul.mubr.msk.f32.vlgmr.msra.gmra.mxu0 %vm685_vm4, %v682_v1 }
 0x5fc   :  { %1254 = vmatprep.mubr.msk.f32.mxu0 %vm1317_vm0, %v1316_v0  ;;  %1247 = vmatpush3.msra.mxu0 %v903_v33 }
 0x5fd   :  { %1248 = vmatprep.subr.mxu0 %v1316_v0 }
 0x5fe   :  { %1249 = vmatpush3.msra.mxu0 %v902_v34 }
 0x5ff   :  { %1250 = vmatprep.subr.mxu0 %v1316_v0 }
 0x600   :  { %1251 = vmatpush3.msra.mxu0 %v901_v35 }
 0x601   :  { %1252 = vmatprep.subr.mxu0 %v1316_v0 }
 0x602   :  { %1253 = vmatpush3.msra.mxu0 %v900_v37 }
 0x6bb   :  { %v755_v6 = vpop.f32.mrf.mxu0 }
 0x6bc   :  { %v759_v7 = vrot.slane %v755_v6, 4 }
 0x6bd   :  { %v1234_v8 = vpop.f32.mrf.mxu0 }
 0x6be   :  { %v760_v9 = vadd.f32 %v759_v7, %v755_v6 }
 0x6c0   :  { %v761_v10 = vrot.slane %v760_v9, 2 }
 0x6c2   :  { %v762_v11 = vadd.f32 %v761_v10, %v760_v9 }
 0x6c4   :  { %v763_v12 = vrot.slane %v762_v11, 1 }
 0x6c6   :  { %v764_v13 = vadd.f32 %v763_v12, %v762_v11 }
 0x6c8   :  { %v765_v14 = vmul.f32 0.125, %v764_v13 }
 0x6ca   :  { %v766_v15 = vsub.f32 %v755_v6, %v765_v14 }
 0x6cc   :  { %v767_v16 = vmul.f32 %v766_v15, %v766_v15 }
 0x6ce   :  { %v768_v17 = vrot.slane %v767_v16, 4 }
 0x6d0   :  { %v769_v18 = vadd.f32 %v768_v17, %v767_v16 }
 0x6d2   :  { %v770_v19 = vrot.slane %v769_v18, 2 }
 0x6d4   :  { %v771_v20 = vadd.f32 %v770_v19, %v769_v18 }
 0x6d6   :  { %v772_v21 = vrot.slane %v771_v20, 1 }
 0x6d8   :  { %v773_v22 = vadd.f32 %v772_v21, %v771_v20 }
 0x6da   :  { %v774_v23 = vmul.f32 0.125, %v773_v22 }
 0x6dc   :  { %v777_v24 = vadd.f32 1e-05, %v774_v23 }
 0x6de   :  { %1285 = vrsqrt.f32 %v777_v24  ;;  %v993_v24 = vld [vmem:[%s1485_s2 + $0x20] sm:$0x1] }
 0x6eb   :  { %v1286_v26 = vpop.eup %1285 }
 0x6ec   :  { %v779_v27 = vmul.f32 %v1286_v26, %v775_v25 }
 0x6ee   :  { %v783_v28 = vrot.slane %v779_v27, %v1367_v36 }
 0x6f0   :  { %v784_v30 = vmul.f32 %v783_v28, %v766_v15  ;;  %v1114_v28 = vld [vmem:[%s1485_s2 + $0x21] ss:$0 sm:$0xff] }
 0x6f2   :  { %v789_v31 = vadd.f32 %v1110_v29, %v784_v30 }
 0x6f4   :  { %v790_v32 = vmax.f32 %v789_v31, 0.0 }
 0x6f6   :  { %1244 = vmatmul.mubr.msk.f32.vlgmr.msra.gmra.mxu1 %vm147_vm2, %v790_v32  ;;  %v1115_v32 = vld [vmem:[%s1485_s2 + $0x2] ss:$0 sm:$0xff] }
 0x6f7   :  { %1265 = vmatprep.mubr.msk.f32.mxu1 %vm1317_vm0, %v1316_v0  ;;  %1258 = vmatpush3.msra.mxu1 %v1012_v2 }
 0x6f8   :  { %1259 = vmatprep.subr.mxu1 %v1316_v0 }
 0x6f9   :  { %1260 = vmatpush3.msra.mxu1 %v1011_v3 }
 0x6fa   :  { %1261 = vmatprep.subr.mxu1 %v1316_v0 }
 0x6fb   :  { %1262 = vmatpush3.msra.mxu1 %v1010_v4 }
 0x6fc   :  { %1263 = vmatprep.subr.mxu1 %v1316_v0 }
 0x6fd   :  { %1264 = vmatpush3.msra.mxu1 %v1009_v5 }
 0x7b6   :  { %v864_v38 = vpop.f32.mrf.mxu1 }
 0x7b7   :  { %v868_v39 = vrot.slane %v864_v38, 4 }
 0x7b8   :  { %v1245_v40 = vpop.f32.mrf.mxu1 }
 0x7b9   :  { %v869_v41 = vadd.f32 %v868_v39, %v864_v38 }
 0x7bb   :  { %v870_v42 = vrot.slane %v869_v41, 2 }
 0x7bd   :  { %v871_v43 = vadd.f32 %v870_v42, %v869_v41 }
 0x7bf   :  { %v872_v44 = vrot.slane %v871_v43, 1 }
 0x7c1   :  { %v873_v45 = vadd.f32 %v872_v44, %v871_v43 }
 0x7c3   :  { %v874_v46 = vmul.f32 0.125, %v873_v45 }
 0x7c5   :  { %v875_v47 = vsub.f32 %v864_v38, %v874_v46 }
 0x7c7   :  { %v876_v48 = vmul.f32 %v875_v47, %v875_v47 }
 0x7c9   :  { %v877_v49 = vrot.slane %v876_v48, 4 }
 0x7cb   :  { %v878_v50 = vadd.f32 %v877_v49, %v876_v48 }
 0x7cd   :  { %v879_v51 = vrot.slane %v878_v50, 2 }
 0x7cf   :  { %v880_v52 = vadd.f32 %v879_v51, %v878_v50 }
 0x7d1   :  { %v881_v53 = vrot.slane %v880_v52, 1 }
 0x7d3   :  { %v882_v54 = vadd.f32 %v881_v53, %v880_v52 }
 0x7d5   :  { %v883_v55 = vmul.f32 0.125, %v882_v54 }
 0x7d7   :  { %v886_v56 = vadd.f32 1e-05, %v883_v55 }
 0x7d9   :  { %1287 = vrsqrt.f32 %v886_v56 }
 0x7e6   :  { %v1288_v58 = vpop.eup %1287 }
 0x7e7   :  { %v888_v59 = vmul.f32 %v1288_v58, %v884_v57 }
 0x7e9   :  { %v892_v60 = vrot.slane %v888_v59, %v1367_v36 }
 0x7eb   :  { %v893_v62 = vmul.f32 %v892_v60, %v875_v47 }
 0x7ed   :  { %v898_v63 = vadd.f32 %v1112_v61, %v893_v62 }
 0x7ef   :  { %v899_v1 = vmax.f32 %v898_v63, 0.0 }
 0x7f1   :  { %1255 = vmatmul.mubr.msk.f32.vlgmr.msra.gmra.mxu0 %vm147_vm2, %v899_v1 }
 0x8b1   :  { %v973_v6 = vpop.f32.mrf.mxu0 }
 0x8b2   :  { %v977_v7 = vrot.slane %v973_v6, 4 }
 0x8b3   :  { %v1256_v8 = vpop.f32.mrf.mxu0 }
 0x8b4   :  { %v978_v9 = vadd.f32 %v977_v7, %v973_v6 }
 0x8b6   :  { %v979_v10 = vrot.slane %v978_v9, 2 }
 0x8b8   :  { %v980_v11 = vadd.f32 %v979_v10, %v978_v9 }
 0x8ba   :  { %v981_v12 = vrot.slane %v980_v11, 1 }
 0x8bc   :  { %v982_v13 = vadd.f32 %v981_v12, %v980_v11 }
 0x8be   :  { %v983_v14 = vmul.f32 0.125, %v982_v13 }
 0x8c0   :  { %v984_v15 = vsub.f32 %v973_v6, %v983_v14 }
 0x8c2   :  { %v985_v16 = vmul.f32 %v984_v15, %v984_v15 }
 0x8c4   :  { %v986_v17 = vrot.slane %v985_v16, 4 }
 0x8c6   :  { %v987_v18 = vadd.f32 %v986_v17, %v985_v16 }
 0x8c8   :  { %v988_v19 = vrot.slane %v987_v18, 2 }
 0x8ca   :  { %v989_v20 = vadd.f32 %v988_v19, %v987_v18 }
 0x8cc   :  { %v990_v21 = vrot.slane %v989_v20, 1 }
 0x8ce   :  { %v991_v22 = vadd.f32 %v990_v21, %v989_v20 }
 0x8d0   :  { %v992_v0 = vmul.f32 0.125, %v991_v22 }
 0x8d2   :  { %v995_v23 = vadd.f32 1e-05, %v992_v0 }
 0x8d4   :  { %1289 = vrsqrt.f32 %v995_v23 }
 0x8e1   :  { %v1290_v25 = vpop.eup %1289 }
 0x8e2   :  { %v997_v26 = vmul.f32 %v1290_v25, %v993_v24 }
 0x8e4   :  { %v1001_v27 = vrot.slane %v997_v26, %v1367_v36 }
 0x8e6   :  { %v1002_v29 = vmul.f32 %v1001_v27, %v984_v15 }
 0x8e8   :  { %v1007_v30 = vadd.f32 %v1114_v28, %v1002_v29 }
 0x8ea   :  { %v1008_v31 = vmax.f32 %v1007_v30, 0.0 }
 0x8ec   :  { %1266 = vmatmul.mubr.msk.f32.vlgmr.msra.gmra.mxu1 %vm147_vm2, %v1008_v31 }
 0x9ac   :  { %v1087_v33 = vpop.f32.mrf.mxu1 }
 0x9ad   :  { %v1088_v34 = vadd.f32 %v1115_v32, %v1087_v33 }
 0x9ae   :  { %v1267_v35 = vpop.f32.mrf.mxu1 }
 0x9af   :  { %1091 = vst [vmem:[%s1486_s3] sm:$0xff] %v1088_v34 }
 0x9b0   :  { %1096 = vsyncpa [#allocation3], 1 }

</bundles_post_ra>
